<compile_context>
chip_gen: v7x
topology: tpu7x:2x2x1
jax: 0.10.0
libtpu: 0.0.40
codegen_flags: <defaults>
</compile_context>

<pallas_src>
import functools

import numpy as np
import jax
import jax.numpy as jnp
from jax.experimental import pallas as pl
from jax.experimental.pallas import tpu as pltpu

# Deterministic stand-in for model_config.ALPHA (SlowFast default).
ALPHA = 4


def _slow_indices(t: int, alpha: int) -> np.ndarray:
    """torch.linspace(0, t-1, t // alpha).long(), computed in float64."""
    t_slow = t // alpha
    if t_slow <= 0:
        return np.zeros((0,), dtype=np.int64)
    return np.linspace(0.0, float(t - 1), t_slow, dtype=np.float64).astype(np.int64)


def _gather_copy_kernel(x_hbm, o_hbm, sems, *, idx):
    # x_hbm: (C, T, H*W) raw HBM ref; o_hbm: (C, t_slow, H*W) raw HBM ref.
    # Pure strided HBM->HBM copy: one DMA per slow-pathway frame, all started
    # back-to-back (all descriptors in flight), then wait on all of them.
    copies = []
    for i, t in enumerate(idx):
        cp = pltpu.make_async_copy(
            x_hbm.at[:, pl.ds(int(t), 1), :],
            o_hbm.at[:, pl.ds(int(i), 1), :],
            sems.at[i],
        )
        cp.start()
        copies.append(cp)
    for cp in copies:
        cp.wait()


def pack_pathway(frames: jax.Array, alpha: int = ALPHA):
    """Returns [slow_pathway, fast_pathway], matching the PyTorch module."""
    C, T, H, W = frames.shape
    idx = _slow_indices(T, alpha)
    t_slow = int(idx.shape[0])

    # fast_pathway is the unmodified input tensor (pure identity in PyTorch).
    fast = frames

    if t_slow == 0:
        # Degenerate case T < alpha: empty temporal axis on the slow pathway.
        return [jnp.zeros((C, 0, H, W), frames.dtype), fast]

    # Free contiguous reshape: each temporal slice becomes C rows of H*W
    # contiguous elements -> simple, efficient strided DMA descriptors.
    x_flat = frames.reshape(C, T, H * W)

    slow_flat = pl.pallas_call(
        functools.partial(_gather_copy_kernel, idx=[int(v) for v in idx]),
        out_shape=jax.ShapeDtypeStruct((C, t_slow, H * W), frames.dtype),
        in_specs=[pl.BlockSpec(memory_space=pl.ANY)],
        out_specs=pl.BlockSpec(memory_space=pl.ANY),
        scratch_shapes=[pltpu.SemaphoreType.DMA((t_slow,))],
    )(x_flat)

    slow = slow_flat.reshape(C, t_slow, H, W)
    return [slow, fast]


if __name__ == "__main__":
    key = jax.random.PRNGKey(0)

    # Primary small demo clip: 3 channels, 8 frames, 16x16 spatial.
    C, T, H, W = 3, 8, 16, 16
    frames = jax.random.normal(key, (C, T, H, W), dtype=jnp.float32)

    slow, fast = pack_pathway(frames, ALPHA)
    slow = jax.block_until_ready(slow)
    fast = jax.block_until_ready(fast)

    ref_idx = jnp.asarray(_slow_indices(T, ALPHA), dtype=jnp.int32)
    ref_slow = jnp.take(frames, ref_idx, axis=1)
    assert slow.shape == (C, T // ALPHA, H, W)
    assert fast.shape == (C, T, H, W)
    assert jnp.array_equal(slow, ref_slow)
    assert jnp.array_equal(fast, frames)

    # Secondary check: non-divisible T (non-uniform stride gather) and
    # non-square spatial dims.
    C2, T2, H2, W2 = 3, 13, 8, 24
    frames2 = jax.random.normal(jax.random.PRNGKey(1), (C2, T2, H2, W2),
                                dtype=jnp.float32)
    slow2, fast2 = pack_pathway(frames2, ALPHA)
    slow2 = jax.block_until_ready(slow2)
    ref_idx2 = jnp.asarray(_slow_indices(T2, ALPHA), dtype=jnp.int32)
    ref_slow2 = jnp.take(frames2, ref_idx2, axis=1)
    assert slow2.shape == (C2, T2 // ALPHA, H2, W2)
    assert jnp.array_equal(slow2, ref_slow2)
    assert jnp.array_equal(fast2, frames2)

    print("KERNEL_OK")
</pallas_src>

<mosaic_0001>
module attributes {stable_mosaic.version = 11 : i64} {
  func.func @_gather_copy_kernel(%arg0: memref<3x8x256xf32, #tpu.memory_space<any>>, %arg1: memref<3x2x256xf32, #tpu.memory_space<any>>, %arg2: memref<2x!tpu.dma_semaphore, #tpu.memory_space<semaphore_mem>>) attributes {dimension_semantics = [], scalar_prefetch = 0 : i64, scratch_operands = 1 : i64, tpu.core_type = #tpu.core_type<tc>} {
    %c0_i32 = arith.constant 0 : i32
    %c0_i32_0 = arith.constant 0 : i32
    %c0_i32_1 = arith.constant 0 : i32
    %c0_i32_2 = arith.constant 0 : i32
    %0 = tpu.memref_slice %arg0[%c0_i32_0, %c0_i32_1, %c0_i32_2] : memref<3x8x256xf32, #tpu.memory_space<any>> -> memref<3x1x256xf32, #tpu.memory_space<any>>
    %c0_i32_3 = arith.constant 0 : i32
    %c0_i32_4 = arith.constant 0 : i32
    %c0_i32_5 = arith.constant 0 : i32
    %1 = tpu.memref_slice %arg1[%c0_i32_3, %c0_i32_4, %c0_i32_5] : memref<3x2x256xf32, #tpu.memory_space<any>> -> memref<3x1x256xf32, #tpu.memory_space<any>>
    %2 = tpu.memref_slice %arg2[%c0_i32] : memref<2x!tpu.dma_semaphore, #tpu.memory_space<semaphore_mem>> -> memref<1x!tpu.dma_semaphore, #tpu.memory_space<semaphore_mem>>
    %3 = tpu.memref_squeeze %2 : memref<1x!tpu.dma_semaphore, #tpu.memory_space<semaphore_mem>> -> memref<!tpu.dma_semaphore, #tpu.memory_space<semaphore_mem>>
    tpu.enqueue_dma source(%0 : memref<3x1x256xf32, #tpu.memory_space<any>>) target(%1 : memref<3x1x256xf32, #tpu.memory_space<any>>) target_semaphore(%3 : memref<!tpu.dma_semaphore, #tpu.memory_space<semaphore_mem>>)
    %c1_i32 = arith.constant 1 : i32
    %c0_i32_6 = arith.constant 0 : i32
    %c7_i32 = arith.constant 7 : i32
    %c0_i32_7 = arith.constant 0 : i32
    %4 = tpu.memref_slice %arg0[%c0_i32_6, %c7_i32, %c0_i32_7] : memref<3x8x256xf32, #tpu.memory_space<any>> -> memref<3x1x256xf32, #tpu.memory_space<any>>
    %c0_i32_8 = arith.constant 0 : i32
    %c1_i32_9 = arith.constant 1 : i32
    %c0_i32_10 = arith.constant 0 : i32
    %5 = tpu.memref_slice %arg1[%c0_i32_8, %c1_i32_9, %c0_i32_10] : memref<3x2x256xf32, #tpu.memory_space<any>> -> memref<3x1x256xf32, #tpu.memory_space<any>>
    %6 = tpu.memref_slice %arg2[%c1_i32] : memref<2x!tpu.dma_semaphore, #tpu.memory_space<semaphore_mem>> -> memref<1x!tpu.dma_semaphore, #tpu.memory_space<semaphore_mem>>
    %7 = tpu.memref_squeeze %6 : memref<1x!tpu.dma_semaphore, #tpu.memory_space<semaphore_mem>> -> memref<!tpu.dma_semaphore, #tpu.memory_space<semaphore_mem>>
    tpu.enqueue_dma source(%4 : memref<3x1x256xf32, #tpu.memory_space<any>>) target(%5 : memref<3x1x256xf32, #tpu.memory_space<any>>) target_semaphore(%7 : memref<!tpu.dma_semaphore, #tpu.memory_space<semaphore_mem>>)
    %c0_i32_11 = arith.constant 0 : i32
    %c0_i32_12 = arith.constant 0 : i32
    %c0_i32_13 = arith.constant 0 : i32
    %c0_i32_14 = arith.constant 0 : i32
    %8 = tpu.memref_slice %arg0[%c0_i32_12, %c0_i32_13, %c0_i32_14] : memref<3x8x256xf32, #tpu.memory_space<any>> -> memref<3x1x256xf32, #tpu.memory_space<any>>
    %c0_i32_15 = arith.constant 0 : i32
    %c0_i32_16 = arith.constant 0 : i32
    %c0_i32_17 = arith.constant 0 : i32
    %9 = tpu.memref_slice %arg1[%c0_i32_15, %c0_i32_16, %c0_i32_17] : memref<3x2x256xf32, #tpu.memory_space<any>> -> memref<3x1x256xf32, #tpu.memory_space<any>>
    %10 = tpu.memref_slice %arg2[%c0_i32_11] : memref<2x!tpu.dma_semaphore, #tpu.memory_space<semaphore_mem>> -> memref<1x!tpu.dma_semaphore, #tpu.memory_space<semaphore_mem>>
    %11 = tpu.memref_squeeze %10 : memref<1x!tpu.dma_semaphore, #tpu.memory_space<semaphore_mem>> -> memref<!tpu.dma_semaphore, #tpu.memory_space<semaphore_mem>>
    tpu.wait_dma2 semaphore(%11 : memref<!tpu.dma_semaphore, #tpu.memory_space<semaphore_mem>>) src(%8 : memref<3x1x256xf32, #tpu.memory_space<any>>) dst(%9 : memref<3x1x256xf32, #tpu.memory_space<any>>)
    %c1_i32_18 = arith.constant 1 : i32
    %c0_i32_19 = arith.constant 0 : i32
    %c7_i32_20 = arith.constant 7 : i32
    %c0_i32_21 = arith.constant 0 : i32
    %12 = tpu.memref_slice %arg0[%c0_i32_19, %c7_i32_20, %c0_i32_21] : memref<3x8x256xf32, #tpu.memory_space<any>> -> memref<3x1x256xf32, #tpu.memory_space<any>>
    %c0_i32_22 = arith.constant 0 : i32
    %c1_i32_23 = arith.constant 1 : i32
    %c0_i32_24 = arith.constant 0 : i32
    %13 = tpu.memref_slice %arg1[%c0_i32_22, %c1_i32_23, %c0_i32_24] : memref<3x2x256xf32, #tpu.memory_space<any>> -> memref<3x1x256xf32, #tpu.memory_space<any>>
    %14 = tpu.memref_slice %arg2[%c1_i32_18] : memref<2x!tpu.dma_semaphore, #tpu.memory_space<semaphore_mem>> -> memref<1x!tpu.dma_semaphore, #tpu.memory_space<semaphore_mem>>
    %15 = tpu.memref_squeeze %14 : memref<1x!tpu.dma_semaphore, #tpu.memory_space<semaphore_mem>> -> memref<!tpu.dma_semaphore, #tpu.memory_space<semaphore_mem>>
    tpu.wait_dma2 semaphore(%15 : memref<!tpu.dma_semaphore, #tpu.memory_space<semaphore_mem>>) src(%12 : memref<3x1x256xf32, #tpu.memory_space<any>>) dst(%13 : memref<3x1x256xf32, #tpu.memory_space<any>>)
    return
  }
}

</mosaic_0001>

<bundles_post_ra>
// kernel: tpu_custom_call.1
= control target key start
LH: loop header
LB: loop body
LE: loop exit
PB: predicated region body
PF: predicated region fallthrough
CT: control target
= control target key end

     0   :  { %s80_s6 = smov 128   ;;  %s81_s7 = smov 32   ;;  %s110_s0 = inlined_call_operand.hbm [shape: f32[3,8,256], index: 0, kind: input, shape index: {}]   ;;  %s111_s1 = inlined_call_operand.hbm [shape: f32[3,2,256], index: 1, kind: output, shape index: {}]  }
   0x1   :  { %18 = sst [smem:[#allocation4]] %s80_s6  ;;  %s82_s8 = smov 1  }
   0x2   :  { %20 = sst [smem:[#allocation4 + $0x1]] %s81_s7  ;;  %s25_s11 = scalar_lea.hbm %s110_s0, 112 }
   0x3   :  { %22 = sst [smem:[#allocation4 + $0x2]] %s82_s8  ;;  %s83_s12 = smov [#allocation2]  }
   0x4   :  { %s84_s13 = smov [#allocation3]   ;;  %s85_s14 = smov 0  }
   0x5   :  { %24 = dma.general %s110_s0, 96, %s111_s1, %s83_s12, %s84_s13, [#allocation4], %s85_s14, 0  }
   0x6   :  { %40 = sst [smem:[#allocation6]] %s80_s6  ;;  %s26_s21 = scalar_lea.hbm %s111_s1, 16 }
   0x7   :  { %42 = sst [smem:[#allocation6 + $0x1]] %s81_s7  ;;  %s86_s22 = smov [#allocation2 + $0x1]  }
   0x8   :  { %44 = sst [smem:[#allocation6 + $0x2]] %s82_s8  ;;  %s87_s23 = smov [#allocation5]  }
   0x9   :  { %46 = dma.general %s25_s11, 96, %s26_s21, %s86_s22, %s87_s23, [#allocation6], %s85_s14, 0  }
   0xa   :  { %76 = dma.done.wait [#allocation2], 96 }
   0xb   :  { %77 = vsyncadd [#allocation2], 4294967200 }
   0xc   :  { %78 = dma.done.wait [#allocation2 + $0x1], 96 }
   0xd   :  { %79 = vsyncadd [#allocation2 + $0x1], 4294967200 }
   0xe   :  { %53 = vsyncmov [#allocation2] }
  0x11   :  { %s54_s24 = vpop.sfrf %53 }
  0x12   :  { %p66_p0 = scmp.ne.s32.totalorder %s54_s24, 0 }
  0x14   :  { %58 = shalt.err (%p66_p0)  }
  0x15   :  { %60 = vsyncmov [#allocation2 + $0x1] }
  0x18   :  { %s61_s0 = vpop.sfrf %60 }
  0x19   :  { %p67_p1 = scmp.ne.s32.totalorder %s61_s0, 0 }
  0x1b   :  { %65 = shalt.err (%p67_p1)  }

</bundles_post_ra>
